<compile_context>
chip_gen: v7x
topology: tpu7x:2x2x1
jax: 0.10.0
libtpu: 0.0.40
codegen_flags: <defaults>
</compile_context>

<pallas_src>
import functools

import jax
import jax.numpy as jnp
from jax.experimental import pallas as pl
from jax.experimental.pallas import tpu as pltpu

LANE = 128
SUBLANE = 8
CHUNK_TARGET = 32                   # rows per inner loop step (mult. of every packing)
MAX_TILE_BYTES = 2 * 1024 * 1024    # ~2 MiB per input tile in its native dtype


def _round_up(a, m):
    return -(-a // m) * m


def _sublane_packing(itemsize):
    # Minimum second-minor tile multiple for the dtype's sublane packing.
    return {4: 8, 2: 16, 1: 32}.get(itemsize, 8)


def _mse_reinforce_partial_kernel(x_ref, y_ref, out_ref, *, rows_total,
                                  tile_rows, chunk, num_blocks, needs_mask):
    """Per-grid-block partial sum of w * (x - y)^2 with w = 20 if x > y else 1.

    Streams the (tile_rows, 128) tile in (chunk, 128) slices so sub/cmp/select/
    mul stay in vregs, accumulating into chunk//8 independent (8, 128)
    accumulators; writes one lane-dense (8, 128) partial per grid step.
    """
    n_chunks = tile_rows // chunk
    n_acc = chunk // SUBLANE
    block_row0 = pl.program_id(0) * tile_rows

    def partial_sum(mask_rows):
        if mask_rows:
            # Row-level mask only (no flat element index -> no i32 overflow);
            # iota hoisted out of the loop (broadcasts are not CSE'd).
            row_iota = jax.lax.broadcasted_iota(jnp.int32, (chunk, LANE), 0)

        def body(c, acc):
            start = c * chunk
            if not isinstance(start, int):
                start = pl.multiple_of(start, chunk)
            xb = x_ref[pl.ds(start, chunk), :].astype(jnp.float32)
            yb = y_ref[pl.ds(start, chunk), :].astype(jnp.float32)
            d = xb - yb
            w = jnp.where(xb > yb, jnp.float32(20.0), jnp.float32(1.0))
            loss = w * d * d
            if mask_rows:
                gr = (block_row0 + start) + row_iota
                loss = jnp.where(gr < rows_total, loss, jnp.float32(0.0))
            # (chunk, 128) -> (n_acc, 8, 128): n_acc independent add chains.
            return acc + loss.reshape(n_acc, SUBLANE, LANE)

        acc0 = jnp.zeros((n_acc, SUBLANE, LANE), jnp.float32)
        if n_chunks == 1:
            acc = body(0, acc0)
        else:
            acc = jax.lax.fori_loop(0, n_chunks, body, acc0,
                                    unroll=min(8, n_chunks))
        return jnp.sum(acc, axis=0)           # (8, 128), n_acc - 1 adds

    if needs_mask:
        i = pl.program_id(0)
        last = num_blocks - 1

        @pl.when(i == last)                   # only ragged last block pays mask
        def _():
            out_ref[...] = partial_sum(True)

        @pl.when(i != last)
        def _():
            out_ref[...] = partial_sum(False)
    else:
        out_ref[...] = partial_sum(False)


def mse_reinforce_loss_pallas(x, y):
    """Equivalent of mse_reinforce_loss().forward(x, y) — scalar mean loss."""
    assert x.shape == y.shape, "mse_reinforce_loss expects matching shapes"
    n = x.size
    out_dtype = jnp.result_type(x.dtype, y.dtype)
    if not jnp.issubdtype(out_dtype, jnp.floating):
        out_dtype = jnp.float32

    xf = x.reshape(-1)
    yf = y.reshape(-1)

    rows = n // LANE
    n_main = rows * LANE

    # <128-element tail: tiny plain-jnp reduction — no full-tensor pad copy.
    if n_main != n:
        xt = xf[n_main:].astype(jnp.float32)
        yt = yf[n_main:].astype(jnp.float32)
        dt = xt - yt
        wt = jnp.where(xf[n_main:] > yf[n_main:],
                       jnp.float32(20.0), jnp.float32(1.0))
        tail_sum = jnp.sum(wt * dt * dt)
    else:
        tail_sum = jnp.float32(0.0)

    if rows == 0:
        total = tail_sum
    else:
        itemsize = jnp.dtype(x.dtype).itemsize
        y_itemsize = jnp.dtype(y.dtype).itemsize
        packing = _sublane_packing(itemsize)
        chunk = CHUNK_TARGET if rows >= CHUNK_TARGET else packing

        # ~2 MiB native-dtype tile (4096 rows f32 / 8192 rows bf16), rounded
        # to the chunk size; 2 inputs x 2 buffers = 8 MiB << v5e's 16 MiB.
        max_tile_rows = max(
            chunk, (MAX_TILE_BYTES // (LANE * itemsize)) // chunk * chunk)
        # Aim for >= 2 grid blocks so v7x can shard the parallel axis over
        # both TensorCores, without exceeding the VMEM-friendly cap.
        tile_rows = max(chunk,
                        min(max_tile_rows, _round_up(pl.cdiv(rows, 2), chunk)))
        num_blocks = pl.cdiv(rows, tile_rows)
        # Mask only when the grid over-covers the row count (ragged last block).
        needs_mask = (num_blocks * tile_rows) != rows

        x2 = (xf if n_main == n else xf[:n_main]).reshape(rows, LANE)
        y2 = (yf if n_main == n else yf[:n_main]).reshape(rows, LANE)

        kernel = functools.partial(
            _mse_reinforce_partial_kernel,
            rows_total=rows, tile_rows=tile_rows, chunk=chunk,
            num_blocks=num_blocks, needs_mask=needs_mask)

        cost = pl.CostEstimate(
            flops=5 * n_main,
            transcendentals=0,
            bytes_accessed=n_main * (itemsize + y_itemsize)
            + num_blocks * SUBLANE * LANE * 4)

        partials = pl.pallas_call(
            kernel,
            out_shape=jax.ShapeDtypeStruct((num_blocks * SUBLANE, LANE),
                                           jnp.float32),
            grid=(num_blocks,),
            in_specs=[
                pl.BlockSpec((tile_rows, LANE), lambda i: (i, 0)),
                pl.BlockSpec((tile_rows, LANE), lambda i: (i, 0)),
            ],
            out_specs=pl.BlockSpec((SUBLANE, LANE), lambda i: (i, 0)),
            compiler_params=pltpu.CompilerParams(
                dimension_semantics=("parallel",)),
            cost_estimate=cost,
        )(x2, y2)

        # Tiny finalize: one cross-lane reduction over the partials.
        total = jnp.sum(partials) + tail_sum

    return (total / jnp.float32(n)).astype(out_dtype)


if __name__ == "__main__":
    key = jax.random.PRNGKey(0)
    k1, k2 = jax.random.split(key)
    # Small NCHW-shaped tensors consistent with the module's forward.
    x = jax.random.normal(k1, (2, 4, 16, 16), dtype=jnp.float32)
    y = jax.random.normal(k2, (2, 4, 16, 16), dtype=jnp.float32)

    out = mse_reinforce_loss_pallas(x, y)
    jax.block_until_ready(out)

    # Pure-JAX reference: mean(where(x > y, 20, 1) * (x - y)^2).
    w = jnp.where(x > y, jnp.float32(20.0), jnp.float32(1.0))
    ref = jnp.mean(w * (x - y) ** 2)
    assert jnp.allclose(out, ref, rtol=1e-5, atol=1e-6), (out, ref)

    print("KERNEL_OK")
</pallas_src>

<mosaic_0001>
module attributes {stable_mosaic.version = 11 : i64} {
  func.func @_mse_reinforce_partial_kernel(%arg0: i32, %arg1: memref<8x128xf32, #tpu.memory_space<vmem>>, %arg2: memref<8x128xf32, #tpu.memory_space<vmem>>, %arg3: memref<8x128xf32, #tpu.memory_space<vmem>>) attributes {dimension_semantics = [#tpu.dimension_semantics<parallel>], iteration_bounds = array<i64: 2>, scalar_prefetch = 0 : i64, scratch_operands = 0 : i64, tpu.core_type = #tpu.core_type<tc>, window_params = [{transform_indices = @transform_0, window_bounds = array<i64: 8, 128>}, {transform_indices = @transform_1, window_bounds = array<i64: 8, 128>}, {transform_indices = @transform_2, window_bounds = array<i64: 8, 128>}]} {
    %cst = arith.constant 0.000000e+00 : f32
    %0 = vector.broadcast %cst : f32 to vector<1x8x128xf32>
    %c0 = arith.constant 0 : index
    %c0_0 = arith.constant 0 : index
    %1 = vector.load %arg1[%c0, %c0_0] : memref<8x128xf32, #tpu.memory_space<vmem>>, vector<8x128xf32>
    %c0_1 = arith.constant 0 : index
    %c0_2 = arith.constant 0 : index
    %2 = vector.load %arg2[%c0_1, %c0_2] : memref<8x128xf32, #tpu.memory_space<vmem>>, vector<8x128xf32>
    %3 = arith.subf %1, %2 : vector<8x128xf32>
    %4 = arith.cmpf ogt, %1, %2 : vector<8x128xf32>
    %cst_3 = arith.constant 2.000000e+01 : f32
    %cst_4 = arith.constant 1.000000e+00 : f32
    %5 = vector.broadcast %cst_3 : f32 to vector<8x128xf32>
    %6 = vector.broadcast %cst_4 : f32 to vector<8x128xf32>
    %7 = arith.select %4, %5, %6 : vector<8x128xi1>, vector<8x128xf32>
    %8 = arith.mulf %7, %3 : vector<8x128xf32>
    %9 = arith.mulf %8, %3 : vector<8x128xf32>
    %10 = vector.shape_cast %9 : vector<8x128xf32> to vector<1x8x128xf32>
    %11 = arith.addf %0, %10 : vector<1x8x128xf32>
    %cst_5 = arith.constant dense<0.000000e+00> : vector<8x128xf32>
    %12 = vector.multi_reduction <add>, %11, %cst_5 [0] : vector<1x8x128xf32> to vector<8x128xf32>
    %c0_6 = arith.constant 0 : index
    %c0_7 = arith.constant 0 : index
    %13 = vector.load %arg3[%c0_6, %c0_7] : memref<8x128xf32, #tpu.memory_space<vmem>>, vector<8x128xf32>
    tpu.vector_store %arg3[%c0_6, %c0_7], %12 {strides = array<i32>} : memref<8x128xf32, #tpu.memory_space<vmem>>, vector<8x128xf32>,
    return
  }
  func.func @transform_0(%arg0: i32) -> (i32, i32) {
    %c0_i32 = arith.constant 0 : i32
    %c0_i32_0 = arith.constant 0 : i32
    return %arg0, %c0_i32 : i32, i32
  }
  func.func @transform_1(%arg0: i32) -> (i32, i32) {
    %c0_i32 = arith.constant 0 : i32
    %c0_i32_0 = arith.constant 0 : i32
    return %arg0, %c0_i32 : i32, i32
  }
  func.func @transform_2(%arg0: i32) -> (i32, i32) {
    %c0_i32 = arith.constant 0 : i32
    %c0_i32_0 = arith.constant 0 : i32
    return %arg0, %c0_i32 : i32, i32
  }
}

</mosaic_0001>

<bundles_post_ra>
// kernel: tpu_custom_call.1
= control target key start
LH: loop header
LB: loop body
LE: loop exit
PB: predicated region body
PF: predicated region fallthrough
CT: control target
= control target key end

     0   :  { %7 = vsyncpa [#allocation3], 0  ;;  %s740_s0 = inlined_call_operand.hbm [shape: f32[16,128], index: 0, kind: input, shape index: {}]   ;;  %s741_s1 = inlined_call_operand.hbm [shape: f32[16,128], index: 1, kind: input, shape index: {}]   ;;  %s742_s2 = inlined_call_operand.hbm [shape: f32[16,128], index: 2, kind: output, shape index: {}]  }
   0x1   :  { %9 = vsyncpa [#allocation3 + $0x1], 0 }
   0x2   :  { %10 = vsyncpa [#allocation6], 0 }
   0x3   :  { %12 = vsyncpa [#allocation6 + $0x1], 0 }
   0x4   :  { %13 = vsyncpa [#allocation4], 0 }
   0x5   :  { %15 = vsyncpa [#allocation4 + $0x1], 0  ;;  %s531_s9 = smov 0   ;;  %s533_s10 = smov 0  }
   0x6   :  { %s535_s11 = smov 0   ;;  %s537_s12 = smov 0  }
   0x7 LB: > { %s552_s13 = sadd.s32 4294967295, %s510_s12   ;;  %s313_s14 = sadd.s32 4294967294, %s510_s12   ;;  %s510_s12 = sphi %s537_s12, %s761_s12   ;;  %s506_s11 = sphi %s535_s11, %s760_s11   ;;  %s502_s10 = sphi %s533_s10, %s759_s10   ;;  %s498_s9 = sphi %s531_s9, %s758_s9  }
   0x8   : > { %s556_s15 = sadd.s32 1, %s510_s12   ;;  %s28_s16 = sadd.s32 1, %s506_s11 }
   0x9   : > { %s25_s17 = ssub.s32 %s510_s12, %s556_s15  ;;  %p35_p0 = scmp.ne.s32.totalorder %s506_s11, %s502_s10 }
   0xa   : > { %p26_p1 = scmp.eq.s32.totalorder %s25_s17, 0  ;;  %p36_p2 = scmp.eq.s32.totalorder %s510_s12, 0 }
   0xb   : > { %p41_p3 = scmp.ne.s32.totalorder %s502_s10, %s498_s9  ;;  %p42_p4 = scmp.eq.s32.totalorder %s552_s13, 0 }
   0xc   : > { %s568_s18 = scalar_select %p26_p1, %s506_s11, %s28_s16  }
   0xd   : > { %p570_p5 = por %p36_p2, %p35_p0  ;;  %p574_p6 = por %p42_p4, %p41_p3 }
   0xe   : > { %p91_p7 = scmp.eq.s32.totalorder %s552_s13, 1  ;;  %p97_p8 = scmp.eq.s32.totalorder %s313_s14, 1 }
   0xf   : > { %s746_s20 = scalar_select %p574_p6, 1, 0 }
  0x10   : > { %p345_p10 = scmp.lt.s32.totalorder %s510_s12, 2  ;;  %p581_p11 = por %p91_p7, %p35_p0 }
  0x11   : > { %p585_p12 = por %p97_p8, %p41_p3  ;;  %s590_s23 = sand.u32 1, %s506_s11  }
  0x12   : > { %s747_s21 = scalar_select %p581_p11, 1, 0 }
  0x13   : > { %s748_s22 = scalar_select %p585_p12, 1, 0 }
  0x14   : > { %s317_s24 = sshll.u32 %s510_s12, 7  ;;  %s316_s25 = sshll.u32 %s590_s23, 3 }
  0x15   : > { %s599_s28 = scalar_lea.hbm %s740_s0, %s317_s24  ;;  %s121_s29 = scalar_lea.vmem [#allocation2], %s316_s25 }
  0x16   : > { %s128_s30 = sshll.u32 %s121_s29, 4  ;;  %p605_p13 = pnand %p345_p10, %p570_p5  ;;  %s609_s30 = int_to_ptr.vmem [resolvable:$true] %s128_s30 }
  0x17   : > { %s118_s4 = scalar_lea.sflag [#allocation3], %s590_s23  ;;  %s380_s5 = scalar_lea.hbm %s599_s28, 128 }
  0x18   : > { %p381_p2 = scmp.ne.s32.totalorder %s599_s28, %s380_s5  ;;  %p382_p3 = pneg %p605_p13 }
  0x19   : > { %s385_s8 = scalar_lea.hbm %s740_s0, 256  ;;  %p386_p5 = scmp.lt.u32.totalorder %s599_s28, %s740_s0 }
  0x1a   : > { %p383_p4 = pnand %p382_p3, %p381_p2  ;;  %p387_p8 = scmp.lt.u32.totalorder %s385_s8, %s380_s5 }
  0x1b   : > { %p389_p9 = scmp.lt.u32.totalorder %s380_s5, %s599_s28 }
  0x1c   : > { %p384_p7 = pneg %p383_p4  ;;  %p388_p10 = por %p387_p8, %p386_p5 }
  0x1e   : > { %p390_p0 = por %p389_p9, %p388_p10 }
  0x20   : > { %p391_p1 = pnand %p390_p0, %p384_p7 }
  0x22   : > { %394 = shalt.err (!%p391_p1)
}
  0x23   : > { %s395_s17 = scalar_lea.vmem %s609_s30, 128  ;;  %s512_s19 = smov [#allocation2]  }
  0x24   : > { %p396_p2 = scmp.ne.s32.totalorder %s609_s30, %s395_s17  ;;  %s400_s26 = sshll.u32 %s512_s19, 4  ;;  %s401_s26 = int_to_ptr.vmem [resolvable:$false] %s400_s26 }
  0x25   : > { %s402_s27 = scalar_lea.vmem %s401_s26, 256  ;;  %p403_p11 = scmp.lt.s32.totalorder %s609_s30, %s401_s26 }
  0x26   : > { %p398_p4 = pnand %p396_p2, %p382_p3  ;;  %p404_p5 = scmp.lt.s32.totalorder %s402_s27, %s395_s17 }
  0x28   : > { %p399_p12 = pneg %p398_p4  ;;  %p405_p8 = por %p404_p5, %p403_p11 }
  0x2a   : > { %p406_p9 = pnand %p405_p8, %p399_p12 }
  0x2c   : > { %409 = shalt.err (!%p406_p9)
}
  0x2d   : > { %337 = dma.hbm_to_vmem [thread:$0]  (!%p605_p13), %s599_s28, 128, %s609_s30, %s118_s4  }
  0x2e   : > { %p750_p0 = scmp.lt.s32.totalorder %s510_s12, 3  ;;  %p751_p1 = scmp.ge.s32.totalorder %s510_s12, 1 }
  0x2f   : > { %s652_s7 = scalar_lea.hbm %s741_s1, %s317_s24  ;;  %s139_s8 = scalar_lea.vmem [#allocation5], %s316_s25 }
  0x30   : > { %p643_p7 = pnand %p751_p1, %p750_p0  ;;  %s146_s14 = sshll.u32 %s139_s8, 4  ;;  %s147_s14 = int_to_ptr.vmem [resolvable:$true] %s146_s14 }
  0x31   : > { %s136_s28 = scalar_lea.sflag [#allocation6], %s590_s23  ;;  %s410_s30 = scalar_lea.hbm %s652_s7, 128 }
  0x32   : > { %s752_s29 = scalar_select %p643_p7, 1, 0 }
  0x33   : > { %p411_p11 = scmp.ne.s32.totalorder %s652_s7, %s410_s30  ;;  %s415_s24 = scalar_lea.hbm %s741_s1, 256 }
  0x34   : > { %p416_p2 = scmp.lt.u32.totalorder %s652_s7, %s741_s1  ;;  %p417_p4 = scmp.lt.u32.totalorder %s415_s24, %s410_s30 }
  0x35   : > { %p413_p12 = pnand %p411_p11, %p382_p3  ;;  %p419_p8 = scmp.lt.u32.totalorder %s410_s30, %s652_s7 }
  0x36   : > { %p418_p5 = por %p417_p4, %p416_p2 }
  0x37   : > { %p414_p10 = pneg %p413_p12 }
  0x38   : > { %p420_p9 = por %p419_p8, %p418_p5 }
  0x3a   : > { %p421_p0 = pnand %p420_p9, %p414_p10 }
  0x3c   : > { %424 = shalt.err (!%p421_p0)
}
  0x3d   : > { %s425_s23 = scalar_lea.vmem %s147_s14, 128  ;;  %s513_s25 = smov [#allocation5]  }
  0x3e   : > { %p426_p1 = scmp.ne.s32.totalorder %s147_s14, %s425_s23  ;;  %s430_s26 = sshll.u32 %s513_s25, 4  ;;  %s431_s26 = int_to_ptr.vmem [resolvable:$false] %s430_s26 }
  0x3f   : > { %s432_s27 = scalar_lea.vmem %s431_s26, 256  ;;  %p433_p6 = scmp.lt.s32.totalorder %s147_s14, %s431_s26 }
  0x40   : > { %p428_p11 = pnand %p426_p1, %p382_p3  ;;  %p434_p7 = scmp.lt.s32.totalorder %s432_s27, %s425_s23 }
  0x42   : > { %p429_p12 = pneg %p428_p11  ;;  %p435_p2 = por %p434_p7, %p433_p6 }
  0x44   : > { %p436_p4 = pnand %p435_p2, %p429_p12 }
  0x46   : > { %439 = shalt.err (!%p436_p4)
}
  0x47   : > { %340 = dma.hbm_to_vmem [thread:$0]  (!%p605_p13), %s652_s7, 128, %s147_s14, %s136_s28  }
  0x48   : > { %p753_p10 = scmp.ne.s32.totalorder %s752_s29, 0 }
  0x49   : > { %s679_s5 = sand.u32 (!%p753_p10), 1, %s502_s10   ;;  %p754_p3 = scmp.ne.s32.totalorder (!%p753_p10), %s746_s20, 0 }
  0x4a   : > { %155 = sbr.rel (%p753_p10) target bundleno = 110 (0x6e), region = 28  ;;  %s321_s6 = sshll.u32 (!%p753_p10), %s679_s5, 3 }
  0x4b   : > { %s158_s8 = scalar_lea.sflag (!%p753_p10), [#allocation3], %s679_s5  ;;  %s161_s30 = scalar_lea.vmem (!%p753_p10), [#allocation2], %s321_s6 }
  0x51   : > { %485 = dma.done.wait (%p754_p3), %s158_s8, 128  }
  0x52   : > { %487 = vsyncadd (%p754_p3), %s158_s8, 4294967168  ;;  %s167_s3 = scalar_lea.sflag [#allocation6], %s679_s5  ;;  %s170_s7 = scalar_lea.vmem [#allocation5], %s321_s6 }
  0x53   : > { %489 = dma.done.wait (%p754_p3), %s167_s3, 128  }
  0x54   : > { %491 = vsyncadd (%p754_p3), %s167_s3, 4294967168  ;;  %v196_v0 = vld [vmem:[%s161_s30] sm:$0xff]  ;;  %v197_v1 = vld [vmem:[%s170_s7] sm:$0xff]  ;;  %v514_v3 = vmov 1.0   ;;  %s195_s29 = scalar_lea.vmem [#allocation7], %s321_s6  ;;  %s325_s28 = sshll.u32 %s552_s13, 7 }
  0x55   : > { %v198_v2 = vsub.f32 %v196_v0, %v197_v1  ;;  %vm199_vm0 = vcmp.gt.f32.partialorder %v196_v0, %v197_v1  ;;  %s220_s14 = sshll.u32 %s195_s29, 4  ;;  %s698_s20 = scalar_lea.hbm %s742_s2, %s325_s28  ;;  %s693_s14 = int_to_ptr.vmem [resolvable:$true] %s220_s14 }
  0x56   : > { %v200_v4 = vsel %vm199_vm0, 20.0, %v514_v3  ;;  %s207_s24 = scalar_lea.sflag [#allocation4], %s679_s5  ;;  %s440_s17 = scalar_lea.vmem %s693_s14, 128 }
  0x57   : > { %v201_v5 = vmul.f32 %v200_v4, %v198_v2  ;;  %p441_p6 = scmp.ne.s32.totalorder %s693_s14, %s440_s17  ;;  %p755_p13 = scmp.ne.s32.totalorder %s747_s21, 0 }
  0x58   : > { %s515_s13 = smov [#allocation7]  }
  0x59   : > { %v202_v6 = vmul.f32 %v201_v5, %v198_v2  ;;  %p442_p7 = pnand %p441_p6, %p755_p13  ;;  %s444_s19 = sshll.u32 %s515_s13, 4  ;;  %s445_s19 = int_to_ptr.vmem [resolvable:$false] %s444_s19 }
  0x5a   : > { %s446_s23 = scalar_lea.vmem %s445_s19, 256  ;;  %p447_p8 = scmp.lt.s32.totalorder %s693_s14, %s445_s19 }
  0x5b   : > { %205 = vst [vmem:[%s195_s29] sm:$0xff] %v202_v6  ;;  %p443_p5 = pneg %p442_p7  ;;  %p448_p9 = scmp.lt.s32.totalorder %s446_s23, %s440_s17 }
  0x5d   : > { %p449_p0 = por %p448_p9, %p447_p8 }
  0x5f   : > { %p450_p1 = pnand %p449_p0, %p443_p5 }
  0x61   : > { %453 = shalt.err (!%p450_p1)
}
  0x62   : > { %s454_s25 = scalar_lea.hbm %s698_s20, 128  ;;  %s458_s5 = scalar_lea.hbm %s742_s2, 256 }
  0x63   : > { %p455_p11 = scmp.ne.s32.totalorder %s698_s20, %s454_s25  ;;  %p459_p4 = scmp.lt.u32.totalorder %s698_s20, %s742_s2 }
  0x64   : > { %p460_p10 = scmp.lt.u32.totalorder %s458_s5, %s454_s25  ;;  %p462_p6 = scmp.lt.u32.totalorder %s454_s25, %s698_s20 }
  0x65   : > { %p456_p12 = pnand %p455_p11, %p755_p13 }
  0x66   : > { %p461_p3 = por %p460_p10, %p459_p4 }
  0x67   : > { %p457_p2 = pneg %p456_p12 }
  0x68   : > { %p463_p7 = por %p462_p6, %p461_p3 }
  0x6a   : > { %p464_p5 = pnand %p463_p7, %p457_p2 }
  0x6c   : > { %467 = shalt.err (!%p464_p5)
}
  0x6d   : > { %332 = dma.vmem_to_hbm [thread:$0]  (%p755_p13), %s693_s14, 128, %s698_s20, %s207_s24  }
  0x6e PF: > { %s232_s30 = sand.u32 1, %s498_s9   ;;  %p756_p8 = scmp.ne.s32.totalorder %s748_s22, 0 }
  0x6f   : > { %p757_p9 = scmp.ge.s32.totalorder %s510_s12, 2  ;;  %s233_s3 = scalar_lea.sflag [#allocation4], %s232_s30 }
  0x71   : > { %p342_p0 = pnand %p757_p9, %p756_p8 }
  0x73   : > { %493 = dma.done.wait (!%p342_p0), %s233_s3, 128  }
  0x74   : > { %495 = vsyncadd (!%p342_p0), %s233_s3, 4294967168  ;;  %p18_p1 = scmp.ge.s32.totalorder %s556_s15, 4   ;;  %s758_s9 = smov %s502_s10 }
  0x75   : > { %s759_s10 = smov %s506_s11  ;;  %s760_s11 = smov %s568_s18 }
  0x76   : > { %s761_s12 = smov %s556_s15  ;;  %20 = sbr.rel (!%p18_p1) target bundleno = 7 (0x7), region = 86 }
  0x7d   :  { %238 = vsyncpa [#allocation3], 1 }
  0x7e   :  { %240 = vsyncpa [#allocation3 + $0x1], 1 }
  0x7f   :  { %241 = vsyncpa [#allocation6], 1 }
  0x80   :  { %243 = vsyncpa [#allocation6 + $0x1], 1 }
  0x81   :  { %244 = vsyncpa [#allocation4], 1 }
  0x82   :  { %246 = vsyncpa [#allocation4 + $0x1], 1 }

</bundles_post_ra>
